<compile_context>
chip_gen: v6e
topology: v6e:2x2x1
jax: 0.10.0
libtpu: 0.0.40
codegen_flags: <defaults>
</compile_context>

<pallas_src>
import jax
import jax.numpy as jnp
from jax.experimental import pallas as pl
from jax.experimental.pallas import tpu as pltpu


# ---------------------------------------------------------------------------
# Plain MLP kernel (2D path):  relu(x @ W1 + b1) @ W2 + b2
#   w1_ref = [fc1_w.T ; fc1_b]  (nfeat+1, hidden)
#   w2_ref = [fc2_w.T ; fc2_b]  (hidden+1, out)
# ---------------------------------------------------------------------------
def _mlp_kernel(x_ref, w1_ref, w2_ref, o_ref):
    nfeat = w1_ref.shape[0] - 1
    hid = w2_ref.shape[0] - 1
    h = jnp.maximum(
        jnp.dot(x_ref[...], w1_ref[:nfeat, :], preferred_element_type=jnp.float32)
        + w1_ref[nfeat:, :],
        0.0)
    o_ref[...] = (jnp.dot(h, w2_ref[:hid, :], preferred_element_type=jnp.float32)
                  + w2_ref[hid:, :]).astype(o_ref.dtype)


# ---------------------------------------------------------------------------
# Fused conv-strip + MLP kernel (4D path).  The conv has been folded into
# fc1 on the host, so the kernel is just:
#   h   = relu(row0 @ W1a + row1 @ W1b + b1_fused)
#   out = h @ W2 + b2
#   x_ref  : (B, 1, H, W)   VMEM (only rows 0..1 of channel 0 are read)
#   w1_ref : (2*W + 1, hidden) = [W1a ; W1b ; b1_fused]
#   w2_ref : (hidden + 1, out) = [fc2_w.T ; fc2_b]
# ---------------------------------------------------------------------------
def _fused_conv_mlp_kernel(x_ref, w1_ref, w2_ref, o_ref):
    W = x_ref.shape[3]
    hid = w2_ref.shape[0] - 1
    # Only input rows 0..1 of channel 0 influence conv-output row 0 (the only
    # row surviving the flatten()[:, :input_size] slice).
    x2 = x_ref[:, :, 0:2, :]          # (B, 1, 2, W) static ref slice
    r0 = x2[:, 0, 0, :]               # (B, W)
    r1 = x2[:, 0, 1, :]               # (B, W)
    h = jnp.maximum(
        jnp.dot(r0, w1_ref[:W, :], preferred_element_type=jnp.float32)
        + jnp.dot(r1, w1_ref[W:2 * W, :], preferred_element_type=jnp.float32)
        + w1_ref[2 * W:, :],
        0.0)
    o_ref[...] = (jnp.dot(h, w2_ref[:hid, :], preferred_element_type=jnp.float32)
                  + w2_ref[hid:, :]).astype(o_ref.dtype)


# ---------------------------------------------------------------------------
# One-time parameter packing + conv->fc1 folding (keeps the per-call path
# free of glue ops: the kernels receive exactly 3 operands each).
# ---------------------------------------------------------------------------
def prepare_params(params, image_width=16):
    f32 = jnp.float32
    w1t = params["fc1_w"].T.astype(f32)                 # (nfeat, hidden)
    b1 = params["fc1_b"].reshape(1, -1).astype(f32)     # (1, hidden)
    w2t = params["fc2_w"].T.astype(f32)                 # (hidden, out)
    b2 = params["fc2_b"].reshape(1, -1).astype(f32)     # (1, out)
    nfeat, _ = w1t.shape

    fc1_pack = jnp.concatenate([w1t, b1], axis=0)       # (nfeat+1, hidden)
    fc2_pack = jnp.concatenate([w2t, b2], axis=0)       # (hidden+1, out)

    # --- fold the surviving conv strip into fc1 (exact algebra) ------------
    # conv(x).reshape(B,-1)[:, :nfeat] == channel 0, output row 0, cols<nfeat.
    # Output row 0: the kh=0 taps hit the zero row-pad; kh=1 hits input row 0,
    # kh=2 hits input row 1.  Band (Toeplitz) matrices T0/T1 of shape
    # (W, nfeat) reproduce the 3-tap horizontal filter with SAME column
    # padding (missing band entries at the edges == zero pad).
    W = int(image_width)
    taps_r0 = params["conv1_w"][0, 0, 1, :].astype(f32)   # kh=1 -> input row 0
    taps_r1 = params["conv1_w"][0, 0, 2, :].astype(f32)   # kh=2 -> input row 1
    conv_b0 = params["conv1_b"][0].astype(f32)

    w_idx = jnp.arange(W)[:, None]        # input column index
    j_idx = jnp.arange(nfeat)[None, :]    # conv-output column == fc1 feature
    kw = w_idx - j_idx + 1                # horizontal tap index
    valid = (kw >= 0) & (kw <= 2)
    kw_c = jnp.clip(kw, 0, 2)
    T0 = jnp.where(valid, taps_r0[kw_c], 0.0)            # (W, nfeat)
    T1 = jnp.where(valid, taps_r1[kw_c], 0.0)            # (W, nfeat)

    w1a = T0 @ w1t                                       # (W, hidden)
    w1b = T1 @ w1t                                       # (W, hidden)
    b1_fused = b1 + conv_b0 * jnp.sum(w1t, axis=0, keepdims=True)
    fc1_fused_pack = jnp.concatenate([w1a, w1b, b1_fused], axis=0)  # (2W+1, hidden)

    return {
        "fc1_pack": fc1_pack,
        "fc2_pack": fc2_pack,
        "fc1_fused_pack": fc1_fused_pack,
    }


# ---------------------------------------------------------------------------
# Model glue (mirrors SimpleModel.forward); one gridless pallas_call per
# forward, 3 operands, no grid / compiler_params needed at these shapes.
# ---------------------------------------------------------------------------
def simple_model_forward(prepared, x):
    fc2_pack = prepared["fc2_pack"]
    out_size = fc2_pack.shape[1]
    vmem = pl.BlockSpec(memory_space=pltpu.MemorySpace.VMEM)

    if x.ndim == 4:
        B, cin, H, W = x.shape
        nfeat = prepared["fc1_pack"].shape[0] - 1
        w_prep = (prepared["fc1_fused_pack"].shape[0] - 1) // 2
        # The flattened-NCHW [:, :input_size] slice only sees channel 0 /
        # row 0 / cols < input_size, so the conv was folded into fc1 at prep.
        # TODO(synk): general fallback (cin > 1, H == 1, input_size > W, or a
        # width different from prep time) would need the full conv path.
        assert cin == 1 and H >= 2 and W >= nfeat and W == w_prep
        return pl.pallas_call(
            _fused_conv_mlp_kernel,
            out_shape=jax.ShapeDtypeStruct((B, out_size), jnp.float32),
            in_specs=[vmem, vmem, vmem],
            out_specs=vmem,
        )(x.astype(jnp.float32), prepared["fc1_fused_pack"], fc2_pack)
    else:
        B = x.shape[0]
        return pl.pallas_call(
            _mlp_kernel,
            out_shape=jax.ShapeDtypeStruct((B, out_size), jnp.float32),
            in_specs=[vmem, vmem, vmem],
            out_specs=vmem,
        )(x.astype(jnp.float32), prepared["fc1_pack"], fc2_pack)


# ---------------------------------------------------------------------------
# Deterministic init mimicking PyTorch's default U(-1/sqrt(fan_in), +...)
# ---------------------------------------------------------------------------
def init_params(key, input_size=10, hidden_size=20, output_size=2):
    ks = jax.random.split(key, 6)

    def u(k, shape, fan_in):
        bound = 1.0 / jnp.sqrt(jnp.float32(fan_in))
        return jax.random.uniform(k, shape, jnp.float32, -bound, bound)

    return {
        "fc1_w": u(ks[0], (hidden_size, input_size), input_size),    # (20, 10)
        "fc1_b": u(ks[1], (hidden_size,), input_size),               # (20,)
        "fc2_w": u(ks[2], (output_size, hidden_size), hidden_size),  # (2, 20)
        "fc2_b": u(ks[3], (output_size,), hidden_size),              # (2,)
        "conv1_w": u(ks[4], (8, 1, 3, 3), 1 * 3 * 3),                # OIHW
        "conv1_b": u(ks[5], (8,), 1 * 3 * 3),
    }


def reference_forward(params, x):
    """Pure-JAX reference (no Pallas) for correctness checking."""
    if x.ndim == 4:
        y = jax.lax.conv_general_dilated(
            x, params["conv1_w"], window_strides=(1, 1), padding="SAME",
            dimension_numbers=("NCHW", "OIHW", "NCHW"))
        y = y + params["conv1_b"].reshape(1, -1, 1, 1)
        y = y.reshape(y.shape[0], -1)[:, :10]
    else:
        y = x
    h = jnp.maximum(y @ params["fc1_w"].T + params["fc1_b"], 0.0)
    return h @ params["fc2_w"].T + params["fc2_b"]


if __name__ == "__main__":
    key = jax.random.PRNGKey(0)
    pkey, xkey1, xkey2 = jax.random.split(key, 3)
    params = init_params(pkey)
    prepared = prepare_params(params, image_width=16)   # one-time packing/fold

    # 4D input exercises the fused (conv-folded) path; 2D input the plain MLP.
    x4d = jax.random.normal(xkey1, (2, 1, 16, 16), jnp.float32)
    x2d = jax.random.normal(xkey2, (2, 10), jnp.float32)

    fwd = jax.jit(simple_model_forward)
    out4 = jax.block_until_ready(fwd(prepared, x4d))
    out2 = jax.block_until_ready(fwd(prepared, x2d))

    ref4 = reference_forward(params, x4d)
    ref2 = reference_forward(params, x2d)

    assert out4.shape == (2, 2) and out4.dtype == jnp.float32
    assert out2.shape == (2, 2) and out2.dtype == jnp.float32
    assert jnp.allclose(out4, ref4, atol=1e-4, rtol=1e-4), "conv path mismatch"
    assert jnp.allclose(out2, ref2, atol=1e-4, rtol=1e-4), "mlp path mismatch"

    print("KERNEL_OK")
</pallas_src>

<mosaic_0001>
module attributes {stable_mosaic.version = 11 : i64} {
  func.func @_fused_conv_mlp_kernel(%arg0: memref<2x1x16x16xf32, #tpu.memory_space<vmem>>, %arg1: memref<33x20xf32, #tpu.memory_space<vmem>>, %arg2: memref<21x2xf32, #tpu.memory_space<vmem>>, %arg3: memref<2x2xf32, #tpu.memory_space<vmem>>) attributes {dimension_semantics = [], scalar_prefetch = 0 : i64, scratch_operands = 0 : i64, tpu.core_type = #tpu.core_type<tc>} {
    %c0 = arith.constant 0 : index
    %c0_0 = arith.constant 0 : index
    %c0_1 = arith.constant 0 : index
    %c0_2 = arith.constant 0 : index
    %0 = vector.load %arg0[%c0, %c0_0, %c0_1, %c0_2] : memref<2x1x16x16xf32, #tpu.memory_space<vmem>>, vector<2x1x2x16xf32>
    %1 = vector.extract_strided_slice %0 {offsets = [0, 0, 0, 0], sizes = [2, 1, 1, 16], strides = [1, 1, 1, 1]} : vector<2x1x2x16xf32> to vector<2x1x1x16xf32>
    %2 = vector.shape_cast %1 : vector<2x1x1x16xf32> to vector<2x16xf32>
    %3 = vector.extract_strided_slice %0 {offsets = [0, 0, 1, 0], sizes = [2, 1, 1, 16], strides = [1, 1, 1, 1]} : vector<2x1x2x16xf32> to vector<2x1x1x16xf32>
    %4 = vector.shape_cast %3 : vector<2x1x1x16xf32> to vector<2x16xf32>
    %c0_3 = arith.constant 0 : index
    %c0_4 = arith.constant 0 : index
    %5 = vector.load %arg1[%c0_3, %c0_4] : memref<33x20xf32, #tpu.memory_space<vmem>>, vector<16x20xf32>
    %cst = arith.constant dense<0.000000e+00> : vector<2x20xf32>
    %6 = tpu.matmul %2, %5, %cst {dimension_numbers = #tpu.dot_dimension_numbers<[1], [0], [0], [1], [0, 0, 1, 1], [], []>} : vector<2x16xf32>, vector<16x20xf32>, vector<2x20xf32> -> vector<2x20xf32>
    %c16 = arith.constant 16 : index
    %c0_5 = arith.constant 0 : index
    %7 = vector.load %arg1[%c16, %c0_5] : memref<33x20xf32, #tpu.memory_space<vmem>>, vector<16x20xf32>
    %cst_6 = arith.constant dense<0.000000e+00> : vector<2x20xf32>
    %8 = tpu.matmul %4, %7, %cst_6 {dimension_numbers = #tpu.dot_dimension_numbers<[1], [0], [0], [1], [0, 0, 1, 1], [], []>} : vector<2x16xf32>, vector<16x20xf32>, vector<2x20xf32> -> vector<2x20xf32>
    %9 = arith.addf %6, %8 : vector<2x20xf32>
    %c32 = arith.constant 32 : index
    %c0_7 = arith.constant 0 : index
    %10 = vector.load %arg1[%c32, %c0_7] : memref<33x20xf32, #tpu.memory_space<vmem>>, vector<1x20xf32>
    %11 = vector.broadcast %10 : vector<1x20xf32> to vector<2x20xf32>
    %12 = arith.addf %9, %11 : vector<2x20xf32>
    %cst_8 = arith.constant 0.000000e+00 : f32
    %13 = vector.broadcast %cst_8 : f32 to vector<2x20xf32>
    %14 = arith.maximumf %12, %13 : vector<2x20xf32>
    %c0_9 = arith.constant 0 : index
    %c0_10 = arith.constant 0 : index
    %15 = vector.load %arg2[%c0_9, %c0_10] : memref<21x2xf32, #tpu.memory_space<vmem>>, vector<20x2xf32>
    %cst_11 = arith.constant dense<0.000000e+00> : vector<2x2xf32>
    %16 = tpu.matmul %14, %15, %cst_11 {dimension_numbers = #tpu.dot_dimension_numbers<[1], [0], [0], [1], [0, 0, 1, 1], [], []>} : vector<2x20xf32>, vector<20x2xf32>, vector<2x2xf32> -> vector<2x2xf32>
    %c20 = arith.constant 20 : index
    %c0_12 = arith.constant 0 : index
    %17 = vector.load %arg2[%c20, %c0_12] : memref<21x2xf32, #tpu.memory_space<vmem>>, vector<1x2xf32>
    %18 = vector.broadcast %17 : vector<1x2xf32> to vector<2x2xf32>
    %19 = arith.addf %16, %18 : vector<2x2xf32>
    %c0_13 = arith.constant 0 : index
    %c0_14 = arith.constant 0 : index
    %20 = vector.load %arg3[%c0_13, %c0_14] : memref<2x2xf32, #tpu.memory_space<vmem>>, vector<2x2xf32>
    tpu.vector_store %arg3[%c0_13, %c0_14], %19 {strides = array<i32>} : memref<2x2xf32, #tpu.memory_space<vmem>>, vector<2x2xf32>,
    return
  }
}

</mosaic_0001>

<bundles_post_ra>
// kernel: simple_model_forward.1
= control target key start
LH: loop header
LB: loop body
LE: loop exit
PB: predicated region body
PF: predicated region fallthrough
CT: control target
= control target key end

     0   :  { %v346_v2 = vmov 0.0   ;;  %vm347_vm0 = vmmov 0   ;;  %vm24_vm1 = vcmask 1041409   ;;  %vm26_vm2 = vcmask 130048   ;;  %s412_s0 = inlined_call_operand.vmem [shape: f32[2,1,16,16], index: 0, kind: input, shape index: {}]   ;;  %s413_s1 = inlined_call_operand.vmem [shape: f32[33,20], index: 1, kind: input, shape index: {}]   ;;  %s414_s2 = inlined_call_operand.vmem [shape: f32[21,2], index: 2, kind: input, shape index: {}]   ;;  %s415_s3 = inlined_call_operand.hbm [shape: f32[2,2], index: 3, kind: output, shape index: {}]  }
   0x1   :  { %v20_v0 = vld [vmem:[%s413_s1 + $0x18] sm:$0xff]  ;;  %v15_v1 = vld [vmem:[%s412_s0] sm:$0x3]  ;;  %298 = vmatprep.subr.mxu1 %v346_v2  ;;  %v19_v3 = vld [vmem:[%s413_s1 + $0x10] sm:$0xff]  ;;  %302 = vmatprep.mubr.msk.f32.mxu1 %vm347_vm0, %v346_v2 }
   0x2   :  { %v16_v4 = vld [vmem:[%s412_s0 + $0x10] sm:$0x3]  ;;  %v23_v5 = vrot.slane %v15_v1, 1  ;;  %299 = vmatpush3.msra.mxu1 %v20_v0  ;;  %312 = vmatprep.subr.mxu0 %v346_v2 }
   0x3   :  { %v99_v6 = vrot.slane %v16_v4, 7 }
   0x4   :  { %8 = vsyncpa [#allocation3], 0  ;;  %300 = vmatprep.subr.mxu1 %v346_v2  ;;  %v25_v7 = vsel %vm24_vm1, %v16_v4, %v23_v5  ;;  %v18_v8 = vld [vmem:[%s413_s1 + $0x8] sm:$0xff]  ;;  %318 = vmatprep.mubr.msk.f32.mxu0 %vm347_vm0, %v346_v2  ;;  %v17_v9 = vld [vmem:[%s413_s1] sm:$0xff]  ;;  %vm192_vm3 = vcmask 1043456   ;;  %vm188_vm4 = vcmask 162816  }
   0x5   :  { %301 = vmatpush3.msra.mxu1 %v19_v3  ;;  %v100_v10 = vsel %vm24_vm1, %v99_v6, %v15_v1  ;;  %v182_v11 = vld [vmem:[%s414_s2 + $0x10] sm:$0xf]  ;;  %v181_v12 = vld [vmem:[%s414_s2 + $0x8] sm:$0xff]  ;;  %v180_v13 = vld [vmem:[%s414_s2] sm:$0xff]  ;;  %s348_s6 = smov [#allocation2]   ;;  %vm266_vm5 = vcmask 9216  }
   0x6   :  { %303 = vmatmul.mubr.msk.f32.vlgmr.msra.gmra.mxu1 %vm26_vm2, %v25_v7  ;;  %305 = vmatprep.subr.mxu1 %v346_v2  ;;  %v284_v17 = vld [vmem:[%s413_s1 + $0x20] ss:$0 sm:$0xff]  ;;  %v285_v22 = vld [vmem:[%s414_s2 + $0x14] ss:$0 sm:$0xff]  ;;  %s274_s7 = sshll.u32 %s348_s6, 4  ;;  %s275_s7 = int_to_ptr.vmem [resolvable:$true] %s274_s7 }
   0x7   :  { %306 = vmatpush3.msra.mxu1 %v18_v8  ;;  %309 = vmatprep.mubr.msk.f32.mxu1 %vm347_vm0, %v346_v2  ;;  %s324_s8 = scalar_lea.vmem %s275_s7, 32  ;;  %p329_p1 = scmp.lt.s32.totalorder %s275_s7, %s275_s7 }
   0x8   :  { %307 = vmatprep.subr.mxu1 %v346_v2  ;;  %313 = vmatpush3.msk.msra.mxu0 %vm192_vm3, %v182_v11  ;;  %p325_p0 = scmp.ne.s32.totalorder %s275_s7, %s324_s8  ;;  %p330_p2 = scmp.lt.s32.totalorder %s324_s8, %s324_s8 }
   0x9   :  { %308 = vmatpush3.msra.mxu1 %v17_v9  ;;  %314 = vmatprep.subr.mxu0 %v346_v2 }
   0xa   :  { %310 = vmatmul.mubr.msk.f32.vlgmr.msra.gmra.mxu1 %vm26_vm2, %v100_v10  ;;  %315 = vmatpush3.msra.mxu0 %v181_v12  ;;  %p331_p3 = por %p330_p2, %p329_p1 }
   0xb   :  { %316 = vmatprep.subr.mxu0 %v346_v2 }
   0xc   :  { %317 = vmatpush3.msra.mxu0 %v180_v13  ;;  %p332_p4 = pnand %p331_p3, %p325_p0 }
  0xc6   :  { %v95_v14 = vpop.f32.mrf.mxu1 }
  0xc8   :  { %v304_v15 = vpop.f32.mrf.mxu1 }
  0xca   :  { %v169_v16 = vpop.f32.mrf.mxu1 }
  0xcb   :  { %v170_v18 = vadd.f32 %v169_v16, %v95_v14 }
  0xcc   :  { %v311_v19 = vpop.f32.mrf.mxu1 }
  0xcd   :  { %v178_v20 = vadd.f32 %v284_v17, %v170_v18 }
  0xcf   :  { %v179_v21 = vmax.f32 %v178_v20, 0.0 }
  0xd1   :  { %319 = vmatmul.mubr.msk.f32.vlgmr.msra.gmra.mxu0 %vm188_vm4, %v179_v21 }
 0x191   :  { %v262_v23 = vpop.f32.mrf.mxu0 }
 0x192   :  { %v263_v24 = vadd.f32 %v285_v22, %v262_v23 }
 0x193   :  { %v320_v25 = vpop.f32.mrf.mxu0 }
 0x194   :  { %267 = vst.msk [vmem:[#allocation2] sm:$0x3] %vm266_vm5, %v263_v24 }
 0x195   :  { %335 = shalt.err (!%p332_p4)
}
 0x196   :  { %277 = dma.vmem_to_hbm [thread:$0]  %s275_s7, 32, %s415_s3, [#allocation3]  }
 0x197   :  { %344 = dma.done.wait [#allocation3], 32  }
 0x198   :  { %345 = vsyncadd [#allocation3], 4294967264 }
 0x199   :  { %281 = vsyncpa [#allocation3], 1 }

</bundles_post_ra>
